<compile_context>
chip_gen: v5e
topology: v5e:2x2
jax: 0.10.0
libtpu: 0.0.40
codegen_flags: <defaults>
</compile_context>

<pallas_src>
import jax
import jax.numpy as jnp
import numpy as np
from jax.experimental import pallas as pl
from jax.experimental.pallas import tpu as pltpu

# ----------------------------- sizes (small, consistent with the module) ----
B        = 8      # batch
H_BERT   = 128    # bert_feature_size (pooler / classifier in_features)
D_VGG    = 6      # VGG19 output after classifier[6] = Linear(4096, 6)
H_FUSE   = 1000   # nn.Linear(in_features, 1000)
N_OUT    = 6      # nn.Linear(1000, 6)

D_VGG_PAD = 8     # vgg padded to a sublane multiple (K of the small MXU dot)
H_PAD     = 1024  # H_FUSE padded to a multiple of 128 (lane-dense)
N_PAD     = 128   # N_OUT padded to a full lane width (lane-dense output store)
BIAS_PACK = H_BERT + H_PAD + N_PAD   # 1280 = [bp | b1 | b2], all 128-aligned offsets


# ------------------------------------ kernel --------------------------------
def late_fusion_kernel(cls_ref, vgg_ref,                  # (TB,128), (TB,8)
                       wp_ref, w1a_ref, w1b_ref, w2_ref,  # weights (block 0, resident)
                       bias_ref,                          # (1, 1280) = [bp | b1 | b2]
                       out_ref):                          # (TB, 128)
    # Unpack the packed biases (128-aligned static lane slices -> no copies).
    bp = bias_ref[:, :H_BERT]                    # (1, 128)
    b1 = bias_ref[:, H_BERT:H_BERT + H_PAD]      # (1, 1024)
    b2 = bias_ref[:, H_BERT + H_PAD:]            # (1, 128)

    # BERT pooler: pooler_output = tanh(cls_hidden @ Wp + bp)
    pooled = jnp.tanh(
        jnp.dot(cls_ref[...], wp_ref[...], preferred_element_type=jnp.float32) + bp)

    # concat([pooled, vgg], 1) @ W1 == pooled @ W1[:H_bert] + vgg @ W1[H_bert:]
    # Both contributions on the MXU (the K=8 vgg dot replaces the old VPU FMAs).
    h = (jnp.dot(pooled, w1a_ref[...], preferred_element_type=jnp.float32)
         + jnp.dot(vgg_ref[...], w1b_ref[...], preferred_element_type=jnp.float32)
         + b1)
    h = jnp.maximum(h, 0.0)                      # ReLU; h[:, H_FUSE:] stays exactly 0

    out = jnp.dot(h, w2_ref[...], preferred_element_type=jnp.float32) + b2
    out_ref[...] = out.astype(out_ref.dtype)


# ------------------------------- param prep ----------------------------------
def _pad_axis(x, axis, target):
    pad = target - x.shape[axis]
    if pad == 0:
        return x
    cfg = [(0, 0)] * x.ndim
    cfg[axis] = (0, pad)
    return jnp.pad(x, cfg)


def prepare_params(params_f32):
    """Zero-pad to lane/sublane-dense sizes and pack the small biases.

    Padding invariant (required for correctness): padded columns of W1a/W1b and
    the b1 pad are zero -> padded h columns are ReLU(0)=0; padded rows/cols of W2
    and the b2 pad are zero -> pad never reaches real output columns.
    """
    wp, bp, w1a, w1b, b1, w2, b2 = params_f32
    wp_k  = wp                                                     # (128, 128)  f32
    w1a_k = _pad_axis(w1a, 1, H_PAD)                               # (128, 1024) f32
    w1b_k = _pad_axis(_pad_axis(w1b, 1, H_PAD), 0, D_VGG_PAD)      # (8, 1024)   f32
    w2_k  = _pad_axis(_pad_axis(w2, 0, H_PAD), 1, N_PAD)           # (1024, 128) f32
    b1_k  = _pad_axis(b1, 1, H_PAD)                                # (1, 1024)
    b2_k  = _pad_axis(b2, 1, N_PAD)                                # (1, 128)
    bias_pack = jnp.concatenate([bp, b1_k, b2_k], axis=1)          # (1, 1280)
    return wp_k, w1a_k, w1b_k, w2_k, bias_pack


# ------------------------------- wrapper -------------------------------------
def late_fusion_forward(cls_hidden, vgg_feature, kernel_params, *, batch_tile=None):
    wp, w1a, w1b, w2, bias_pack = kernel_params
    b = cls_hidden.shape[0]
    vgg8 = _pad_axis(vgg_feature, 1, D_VGG_PAD)                    # (B, 8), pad = 0

    # Batch tile: feed the MXU >=256 rows when available (v6e 2x256x256).
    # Weights (~1.2 MB f32) + 2x activation tiles must stay inside the scoped
    # VMEM default (32 MiB on v7x's 64 MiB VMEM) — TB <= ~2048 rows is safe; do
    # not copy larger v5e/v6e (128 MiB) tile choices onto v7x.
    if batch_tile is None:
        batch_tile = min(b, 256)
    tb = batch_tile
    grid = (pl.cdiv(b, tb),)

    # Advisory cost so XLA can overlap this tiny head with backbone work.
    flops = 2 * b * (H_BERT * H_BERT            # pooler dot
                     + H_BERT * H_PAD           # W1a dot
                     + D_VGG_PAD * H_PAD        # W1b dot
                     + H_PAD * N_PAD)           # W2 dot
    bytes_accessed = 4 * (cls_hidden.size + vgg8.size + wp.size + w1a.size
                          + w1b.size + w2.size + bias_pack.size + b * N_PAD)
    cost = pl.CostEstimate(flops=flops,
                           transcendentals=b * H_BERT,
                           bytes_accessed=bytes_accessed)

    out_pad = pl.pallas_call(
        late_fusion_kernel,
        out_shape=jax.ShapeDtypeStruct((b, N_PAD), jnp.float32),
        grid_spec=pltpu.PrefetchScalarGridSpec(
            num_scalar_prefetch=0,
            grid=grid,
            in_specs=[
                # batch-tiled activations
                pl.BlockSpec((tb, H_BERT),       lambda i: (i, 0)),
                pl.BlockSpec((tb, D_VGG_PAD),    lambda i: (i, 0)),
                # weights / packed biases: block (0,0) for every grid step ->
                # DMA'd once, VMEM-resident across all batch tiles.
                pl.BlockSpec((H_BERT, H_BERT),   lambda i: (0, 0)),
                pl.BlockSpec((H_BERT, H_PAD),    lambda i: (0, 0)),
                pl.BlockSpec((D_VGG_PAD, H_PAD), lambda i: (0, 0)),
                pl.BlockSpec((H_PAD, N_PAD),     lambda i: (0, 0)),
                pl.BlockSpec((1, BIAS_PACK),     lambda i: (0, 0)),
            ],
            out_specs=pl.BlockSpec((tb, N_PAD),  lambda i: (i, 0)),
        ),
        compiler_params=pltpu.CompilerParams(
            dimension_semantics=("parallel",)),     # batch axis: shards over v7x's 2 TCs
        cost_estimate=cost,
    )(cls_hidden, vgg8, wp, w1a, w1b, w2, bias_pack)

    # Return the padded (B, 128) slab on purpose (cols N_OUT.. are exactly 0);
    # the consumer can slice or fold it — no extra tiny HLO slice kernel here.
    return out_pad


# ------------------------------- reference (pure JAX, f32) -------------------
def late_fusion_ref(cls_hidden, vgg_feature, params_f32):
    """Faithful f32 math of the PyTorch head using the ORIGINAL unpadded params."""
    wp, bp, w1a, w1b, b1, w2, b2 = params_f32
    hi = jax.lax.Precision.HIGHEST
    pooled = jnp.tanh(jnp.dot(cls_hidden, wp, precision=hi) + bp)        # pooler_output
    concat = jnp.concatenate([pooled, vgg_feature], axis=1)              # (B, 134)
    w1 = jnp.concatenate([w1a, w1b], axis=0)                             # (134, 1000)
    h = jnp.maximum(jnp.dot(concat, w1, precision=hi) + b1, 0.0)
    return jnp.dot(h, w2, precision=hi) + b2                             # (B, 6)


# ------------------------------------- main ----------------------------------
if __name__ == "__main__":
    key = jax.random.PRNGKey(0)
    ks = jax.random.split(key, 9)

    # Deterministic stand-ins for the frozen backbone outputs.
    cls_hidden  = jax.random.normal(ks[0], (B, H_BERT), jnp.float32)   # BERT [CLS] hidden
    vgg_feature = jax.random.normal(ks[1], (B, D_VGG), jnp.float32)    # VGG19(image) -> (B, 6)

    # Deterministic parameter init (weights stored as (in, out)).
    scale = 0.02
    wp  = scale * jax.random.normal(ks[2], (H_BERT, H_BERT), jnp.float32)   # BERT pooler dense
    bp  = scale * jax.random.normal(ks[3], (1, H_BERT), jnp.float32)
    w1a = scale * jax.random.normal(ks[4], (H_BERT, H_FUSE), jnp.float32)   # Linear(in,1000): pooled rows
    w1b = scale * jax.random.normal(ks[5], (D_VGG, H_FUSE), jnp.float32)    # Linear(in,1000): VGG rows
    b1  = scale * jax.random.normal(ks[6], (1, H_FUSE), jnp.float32)
    w2  = scale * jax.random.normal(ks[7], (H_FUSE, N_OUT), jnp.float32)    # Linear(1000,6)
    b2  = scale * jax.random.normal(ks[8], (1, N_OUT), jnp.float32)

    params_f32 = (wp, bp, w1a, w1b, b1, w2, b2)
    kernel_params = prepare_params(params_f32)

    out_pad = jax.block_until_ready(
        late_fusion_forward(cls_hidden, vgg_feature, kernel_params))
    assert out_pad.shape == (B, N_PAD)

    ref = jax.block_until_ready(late_fusion_ref(cls_hidden, vgg_feature, params_f32))

    out_np = np.asarray(out_pad)                       # host-side view; no extra HLO slice
    assert np.allclose(out_np[:, :N_OUT], np.asarray(ref), rtol=1e-3, atol=1e-3)
    assert np.allclose(out_np[:, N_OUT:], 0.0, atol=1e-6)   # pad columns stay exactly zero

    print("KERNEL_OK")
</pallas_src>

<mosaic_0001>
module attributes {stable_mosaic.version = 11 : i64} {
  func.func @late_fusion_kernel(%arg0: i32, %arg1: memref<8x128xf32, #tpu.memory_space<vmem>>, %arg2: memref<8x8xf32, #tpu.memory_space<vmem>>, %arg3: memref<128x128xf32, #tpu.memory_space<vmem>>, %arg4: memref<128x1024xf32, #tpu.memory_space<vmem>>, %arg5: memref<8x1024xf32, #tpu.memory_space<vmem>>, %arg6: memref<1024x128xf32, #tpu.memory_space<vmem>>, %arg7: memref<1x1280xf32, #tpu.memory_space<vmem>>, %arg8: memref<8x128xf32, #tpu.memory_space<vmem>>) attributes {dimension_semantics = [#tpu.dimension_semantics<parallel>], iteration_bounds = array<i64: 1>, scalar_prefetch = 0 : i64, scratch_operands = 0 : i64, tpu.core_type = #tpu.core_type<tc>, window_params = [{transform_indices = @transform_0, window_bounds = array<i64: 8, 128>}, {transform_indices = @transform_1, window_bounds = array<i64: 8, 8>}, {pipeline_mode = #tpu.pipeline_mode<synchronous>, transform_indices = @transform_2, window_bounds = array<i64: 128, 128>}, {pipeline_mode = #tpu.pipeline_mode<synchronous>, transform_indices = @transform_3, window_bounds = array<i64: 128, 1024>}, {pipeline_mode = #tpu.pipeline_mode<synchronous>, transform_indices = @transform_4, window_bounds = array<i64: 8, 1024>}, {pipeline_mode = #tpu.pipeline_mode<synchronous>, transform_indices = @transform_5, window_bounds = array<i64: 1024, 128>}, {pipeline_mode = #tpu.pipeline_mode<synchronous>, transform_indices = @transform_6, window_bounds = array<i64: 1, 1280>}, {transform_indices = @transform_7, window_bounds = array<i64: 8, 128>}]} {
    %c0 = arith.constant 0 : index
    %c0_0 = arith.constant 0 : index
    %0 = vector.load %arg7[%c0, %c0_0] : memref<1x1280xf32, #tpu.memory_space<vmem>>, vector<1x128xf32>
    %c0_1 = arith.constant 0 : index
    %c128 = arith.constant 128 : index
    %1 = vector.load %arg7[%c0_1, %c128] : memref<1x1280xf32, #tpu.memory_space<vmem>>, vector<1x1024xf32>
    %c0_2 = arith.constant 0 : index
    %c1152 = arith.constant 1152 : index
    %2 = vector.load %arg7[%c0_2, %c1152] : memref<1x1280xf32, #tpu.memory_space<vmem>>, vector<1x128xf32>
    %c0_3 = arith.constant 0 : index
    %c0_4 = arith.constant 0 : index
    %3 = vector.load %arg1[%c0_3, %c0_4] : memref<8x128xf32, #tpu.memory_space<vmem>>, vector<8x128xf32>
    %c0_5 = arith.constant 0 : index
    %c0_6 = arith.constant 0 : index
    %4 = vector.load %arg3[%c0_5, %c0_6] : memref<128x128xf32, #tpu.memory_space<vmem>>, vector<128x128xf32>
    %cst = arith.constant dense<0.000000e+00> : vector<8x128xf32>
    %5 = tpu.matmul %3, %4, %cst {dimension_numbers = #tpu.dot_dimension_numbers<[1], [0], [0], [1], [0, 0, 1, 1], [], []>} : vector<8x128xf32>, vector<128x128xf32>, vector<8x128xf32> -> vector<8x128xf32>
    %6 = vector.broadcast %0 : vector<1x128xf32> to vector<8x128xf32>
    %7 = arith.addf %5, %6 : vector<8x128xf32>
    %8 = math.tanh %7 : vector<8x128xf32>
    %c0_7 = arith.constant 0 : index
    %c0_8 = arith.constant 0 : index
    %9 = vector.load %arg4[%c0_7, %c0_8] : memref<128x1024xf32, #tpu.memory_space<vmem>>, vector<128x1024xf32>
    %cst_9 = arith.constant dense<0.000000e+00> : vector<8x1024xf32>
    %10 = tpu.matmul %8, %9, %cst_9 {dimension_numbers = #tpu.dot_dimension_numbers<[1], [0], [0], [1], [0, 0, 1, 1], [], []>} : vector<8x128xf32>, vector<128x1024xf32>, vector<8x1024xf32> -> vector<8x1024xf32>
    %c0_10 = arith.constant 0 : index
    %c0_11 = arith.constant 0 : index
    %11 = vector.load %arg2[%c0_10, %c0_11] : memref<8x8xf32, #tpu.memory_space<vmem>>, vector<8x8xf32>
    %c0_12 = arith.constant 0 : index
    %c0_13 = arith.constant 0 : index
    %12 = vector.load %arg5[%c0_12, %c0_13] : memref<8x1024xf32, #tpu.memory_space<vmem>>, vector<8x1024xf32>
    %cst_14 = arith.constant dense<0.000000e+00> : vector<8x1024xf32>
    %13 = tpu.matmul %11, %12, %cst_14 {dimension_numbers = #tpu.dot_dimension_numbers<[1], [0], [0], [1], [0, 0, 1, 1], [], []>} : vector<8x8xf32>, vector<8x1024xf32>, vector<8x1024xf32> -> vector<8x1024xf32>
    %14 = arith.addf %10, %13 : vector<8x1024xf32>
    %15 = vector.broadcast %1 : vector<1x1024xf32> to vector<8x1024xf32>
    %16 = arith.addf %14, %15 : vector<8x1024xf32>
    %cst_15 = arith.constant 0.000000e+00 : f32
    %17 = vector.broadcast %cst_15 : f32 to vector<8x1024xf32>
    %18 = arith.maximumf %16, %17 : vector<8x1024xf32>
    %c0_16 = arith.constant 0 : index
    %c0_17 = arith.constant 0 : index
    %19 = vector.load %arg6[%c0_16, %c0_17] : memref<1024x128xf32, #tpu.memory_space<vmem>>, vector<1024x128xf32>
    %cst_18 = arith.constant dense<0.000000e+00> : vector<8x128xf32>
    %20 = tpu.matmul %18, %19, %cst_18 {dimension_numbers = #tpu.dot_dimension_numbers<[1], [0], [0], [1], [0, 0, 1, 1], [], []>} : vector<8x1024xf32>, vector<1024x128xf32>, vector<8x128xf32> -> vector<8x128xf32>
    %21 = vector.broadcast %2 : vector<1x128xf32> to vector<8x128xf32>
    %22 = arith.addf %20, %21 : vector<8x128xf32>
    %c0_19 = arith.constant 0 : index
    %c0_20 = arith.constant 0 : index
    %23 = vector.load %arg8[%c0_19, %c0_20] : memref<8x128xf32, #tpu.memory_space<vmem>>, vector<8x128xf32>
    tpu.vector_store %arg8[%c0_19, %c0_20], %22 {strides = array<i32>} : memref<8x128xf32, #tpu.memory_space<vmem>>, vector<8x128xf32>,
    return
  }
  func.func @transform_0(%arg0: i32) -> (i32, i32) {
    %c0_i32 = arith.constant 0 : i32
    %c0_i32_0 = arith.constant 0 : i32
    return %arg0, %c0_i32 : i32, i32
  }
  func.func @transform_1(%arg0: i32) -> (i32, i32) {
    %c0_i32 = arith.constant 0 : i32
    %c0_i32_0 = arith.constant 0 : i32
    return %arg0, %c0_i32 : i32, i32
  }
  func.func @transform_2(%arg0: i32) -> (i32, i32) {
    %c0_i32 = arith.constant 0 : i32
    %c0_i32_0 = arith.constant 0 : i32
    %c0_i32_1 = arith.constant 0 : i32
    return %c0_i32, %c0_i32_0 : i32, i32
  }
  func.func @transform_3(%arg0: i32) -> (i32, i32) {
    %c0_i32 = arith.constant 0 : i32
    %c0_i32_0 = arith.constant 0 : i32
    %c0_i32_1 = arith.constant 0 : i32
    return %c0_i32, %c0_i32_0 : i32, i32
  }
  func.func @transform_4(%arg0: i32) -> (i32, i32) {
    %c0_i32 = arith.constant 0 : i32
    %c0_i32_0 = arith.constant 0 : i32
    %c0_i32_1 = arith.constant 0 : i32
    return %c0_i32, %c0_i32_0 : i32, i32
  }
  func.func @transform_5(%arg0: i32) -> (i32, i32) {
    %c0_i32 = arith.constant 0 : i32
    %c0_i32_0 = arith.constant 0 : i32
    %c0_i32_1 = arith.constant 0 : i32
    return %c0_i32, %c0_i32_0 : i32, i32
  }
  func.func @transform_6(%arg0: i32) -> (i32, i32) {
    %c0_i32 = arith.constant 0 : i32
    %c0_i32_0 = arith.constant 0 : i32
    %c0_i32_1 = arith.constant 0 : i32
    return %c0_i32, %c0_i32_0 : i32, i32
  }
  func.func @transform_7(%arg0: i32) -> (i32, i32) {
    %c0_i32 = arith.constant 0 : i32
    %c0_i32_0 = arith.constant 0 : i32
    return %arg0, %c0_i32 : i32, i32
  }
}

</mosaic_0001>

<bundles_post_ra>
// kernel: tpu_custom_call.1
= control target key start
LH: loop header
LB: loop body
LE: loop exit
PB: predicated region body
PF: predicated region fallthrough
CT: control target
= control target key end

     0   :  { %12 = vsyncpa [#allocation3], 0  ;;  %s1301_s0 = inlined_call_operand.hbm [shape: f32[8,128], index: 0, kind: input, shape index: {}]   ;;  %s1302_s1 = inlined_call_operand.hbm [shape: f32[8,8], index: 1, kind: input, shape index: {}]   ;;  %s1303_s2 = inlined_call_operand.hbm [shape: f32[128,128], index: 2, kind: input, shape index: {}]   ;;  %s1304_s3 = inlined_call_operand.hbm [shape: f32[128,1024], index: 3, kind: input, shape index: {}]   ;;  %s1305_s4 = inlined_call_operand.hbm [shape: f32[8,1024], index: 4, kind: input, shape index: {}]   ;;  %s1306_s5 = inlined_call_operand.hbm [shape: f32[1024,128], index: 5, kind: input, shape index: {}]   ;;  %s1307_s6 = inlined_call_operand.hbm [shape: f32[1,1280], index: 6, kind: input, shape index: {}]   ;;  %s1308_s7 = inlined_call_operand.hbm [shape: f32[8,128], index: 7, kind: output, shape index: {}]  }
   0x1   :  { %13 = vsyncpa [#allocation6], 0 }
   0x2   :  { %14 = vsyncpa [#allocation9], 0 }
   0x3   :  { %15 = vsyncpa [#allocation12], 0  ;;  %s33_s26 = sshll.u32 %s1302_s1, 4  ;;  %s34_s26 = int_to_ptr.hbm [resolvable:$true] %s33_s26 }
   0x4   :  { %16 = vsyncpa [#allocation4], 0  ;;  %s1204_s27 = smov [#allocation5]   ;;  %s56_s8 = sshll.u32 %s1304_s3, 4  ;;  %s57_s8 = int_to_ptr.hbm [resolvable:$true] %s56_s8 }
   0x5   :  { %s35_s28 = sshll.u32 %s1204_s27, 4  ;;  %s1205_s9 = smov [#allocation8]   ;;  %s36_s28 = int_to_ptr.vmem [resolvable:$true] %s35_s28 }
   0x6   :  { %38 = dma.hbm_to_vmem [thread:$0]  %s34_s26, 128, %s36_s28, [#allocation6]  }
   0x7   :  { %s58_s10 = sshll.u32 %s1205_s9, 4  ;;  %s1206_s11 = smov 1024   ;;  %s59_s10 = int_to_ptr.vmem [resolvable:$true] %s58_s10 }
   0x8   :  { %s1207_s12 = smov 64   ;;  %s80_s1 = sshll.u32 %s1306_s5, 4  ;;  %s81_s1 = int_to_ptr.hbm [resolvable:$true] %s80_s1 }
   0x9   :  { %64 = dma.hbm_to_vmem [thread:$0]  %s57_s8, 16384, %s59_s10, [#allocation9], %s1206_s11, %s1206_s11, %s1207_s12  }
   0xa   :  { %s1208_s15 = smov [#allocation11]   ;;  %s22_s3 = sshll.u32 %s1301_s0, 4  ;;  %s23_s3 = int_to_ptr.hbm [resolvable:$true] %s22_s3 }
   0xb   :  { %s82_s16 = sshll.u32 %s1208_s15, 4  ;;  %s1209_s19 = smov 128   ;;  %s83_s16 = int_to_ptr.vmem [resolvable:$true] %s82_s16 }
   0xc   :  { %s1210_s20 = smov 8   ;;  %s1211_s21 = smov [#allocation2]  }
   0xd   :  { %88 = dma.hbm_to_vmem [thread:$0]  %s81_s1, 16384, %s83_s16, [#allocation12], %s1209_s19, %s1209_s19, %s1210_s20  }
   0xe   :  { %s24_s22 = sshll.u32 %s1211_s21, 4  ;;  %s43_s25 = sshll.u32 %s1303_s2, 4  ;;  %s25_s22 = int_to_ptr.vmem [resolvable:$true] %s24_s22  ;;  %s44_s25 = int_to_ptr.hbm [resolvable:$true] %s43_s25 }
   0xf   :  { %27 = dma.hbm_to_vmem [thread:$0]  %s23_s3, 128, %s25_s22, [#allocation3]  }
  0x10   :  { %s70_s27 = sshll.u32 %s1305_s4, 4  ;;  %s1212_s28 = smov [#allocation7]   ;;  %s71_s27 = int_to_ptr.hbm [resolvable:$true] %s70_s27 }
  0x11   :  { %s45_s29 = sshll.u32 %s1212_s28, 4  ;;  %s1213_s0 = smov [#allocation10]   ;;  %s46_s29 = int_to_ptr.vmem [resolvable:$true] %s45_s29 }
  0x12   :  { %51 = dma.hbm_to_vmem [thread:$0]  %s44_s25, 2048, %s46_s29, [#allocation6], %s1209_s19, %s1209_s19, %s1210_s20  }
  0x13   :  { %s72_s30 = sshll.u32 %s1213_s0, 4  ;;  %s94_s10 = sshll.u32 %s1307_s6, 4  ;;  %s73_s30 = int_to_ptr.vmem [resolvable:$true] %s72_s30  ;;  %s95_s10 = int_to_ptr.hbm [resolvable:$true] %s94_s10 }
  0x14   :  { %75 = dma.hbm_to_vmem [thread:$0]  %s71_s27, 1024, %s73_s30, [#allocation9]  }
  0x15   :  { %s1214_s2 = smov [#allocation13]  }
  0x16   :  { %s96_s11 = sshll.u32 %s1214_s2, 4  ;;  %s97_s11 = int_to_ptr.vmem [resolvable:$true] %s96_s11 }
  0x17   :  { %99 = dma.hbm_to_vmem [thread:$0]  %s95_s10, 160, %s97_s11, [#allocation12]  }
  0x18   :  { %1194 = dma.done.wait [#allocation3], 128  }
  0x19   :  { %1195 = vsyncadd [#allocation3], 4294967168 }
  0x1a   :  { %1196 = dma.done.wait [#allocation6], 2176  }
  0x1b   :  { %1197 = vsyncadd [#allocation6], 4294965120 }
  0x1c   :  { %1198 = dma.done.wait [#allocation9], 17408  }
  0x1d   :  { %1199 = vsyncadd [#allocation9], 4294949888 }
  0x1e   :  { %1200 = dma.done.wait [#allocation12], 16544  }
  0x1f   :  { %1201 = vsyncadd [#allocation12], 4294950752  ;;  %v147_v0 = vld [vmem:[#allocation7 + $0x78] sm:$0xff]  ;;  %v146_v1 = vld [vmem:[#allocation7 + $0x70] sm:$0xff]  ;;  %vm309_vm0 = vcmask 64512   ;;  %s1215_s4 = smov [#allocation14]  }
  0x20   :  { %151 = vmatpush.msra.mxu0 %v147_v0  ;;  %v145_v2 = vld [vmem:[#allocation7 + $0x68] sm:$0xff]  ;;  %v144_v3 = vld [vmem:[#allocation7 + $0x60] sm:$0xff]  ;;  %v143_v4 = vld [vmem:[#allocation7 + $0x58] sm:$0xff]  ;;  %s963_s6 = sshll.u32 %s1215_s4, 4  ;;  %s965_s14 = sshll.u32 %s1308_s7, 4  ;;  %s964_s6 = int_to_ptr.vmem [resolvable:$true] %s963_s6  ;;  %s966_s14 = int_to_ptr.hbm [resolvable:$true] %s965_s14 }
  0x21   :  { %v301_v5 = vld [vmem:[#allocation10] sm:$0xff]  ;;  %v302_v6 = vld [vmem:[#allocation10 + $0x8] sm:$0xff]  ;;  %v1277_v7 = vld [vmem:[#allocation5] sm:$0xff] }
  0x22   :  { %152 = vmatpush.msra.mxu0 %v146_v1  ;;  %328 = vmatpush.msra.mxu1 %v301_v5  ;;  %v303_v8 = vld [vmem:[#allocation10 + $0x10] sm:$0xff]  ;;  %v304_v9 = vld [vmem:[#allocation10 + $0x18] sm:$0xff]  ;;  %v305_v10 = vld [vmem:[#allocation10 + $0x20] sm:$0xff] }
  0x23   :  { %348 = vmatpush.msra.mxu2 %v302_v6  ;;  %v142_v11 = vld [vmem:[#allocation7 + $0x50] sm:$0xff]  ;;  %978 = vmatmul.msk.f32.vlgmr.msra.gmra.mxu1 %vm309_vm0, %v1277_v7  ;;  %v306_v12 = vld [vmem:[#allocation10 + $0x28] sm:$0xff]  ;;  %v308_v14 = vld [vmem:[#allocation10 + $0x38] sm:$0xff] }
  0x24   :  { %153 = vmatpush.msra.mxu0 %v145_v2  ;;  %979 = vmatmul.msk.f32.vlgmr.msra.gmra.mxu2 %vm309_vm0, %v1277_v7  ;;  %v307_v13 = vld [vmem:[#allocation10 + $0x30] sm:$0xff]  ;;  %v141_v15 = vld [vmem:[#allocation7 + $0x48] sm:$0xff]  ;;  %v292_v16 = vld [vmem:[#allocation8 + $0x3c0] sm:$0xff] }
  0x25   :  { %368 = vmatpush.msra.mxu3 %v303_v8  ;;  %388 = vmatpush.msrb.mxu1 %v304_v9  ;;  %v140_v17 = vld [vmem:[#allocation7 + $0x40] sm:$0xff]  ;;  %v139_v18 = vld [vmem:[#allocation7 + $0x38] sm:$0xff]  ;;  %v293_v19 = vld [vmem:[#allocation8 + $0x3c8] sm:$0xff] }
  0x26   :  { %154 = vmatpush.msra.mxu0 %v144_v3  ;;  %408 = vmatpush.msrb.mxu2 %v305_v10  ;;  %v294_v20 = vld [vmem:[#allocation8 + $0x3d0] sm:$0xff]  ;;  %v284_v21 = vld [vmem:[#allocation8 + $0x380] sm:$0xff]  ;;  %v285_v23 = vld [vmem:[#allocation8 + $0x388] sm:$0xff] }
  0x27   :  { %428 = vmatpush.msrb.mxu3 %v306_v12  ;;  %448 = vmatpush.msra.mxu1 %v307_v13  ;;  %v138_v22 = vld [vmem:[#allocation7 + $0x30] sm:$0xff]  ;;  %v276_v25 = vld [vmem:[#allocation8 + $0x340] sm:$0xff]  ;;  %v137_v26 = vld [vmem:[#allocation7 + $0x28] sm:$0xff] }
  0x28   :  { %155 = vmatpush.msra.mxu0 %v143_v4  ;;  %468 = vmatpush.msra.mxu2 %v308_v14  ;;  %v286_v24 = vld [vmem:[#allocation8 + $0x390] sm:$0xff]  ;;  %v277_v27 = vld [vmem:[#allocation8 + $0x348] sm:$0xff]  ;;  %v268_v29 = vld [vmem:[#allocation8 + $0x300] sm:$0xff] }
  0x29   :  { %980 = vmatmul.msk.f32.vlgmr.msra.gmra.mxu3 %vm309_vm0, %v1277_v7  ;;  %v278_v28 = vld [vmem:[#allocation8 + $0x350] sm:$0xff]  ;;  %v136_v30 = vld [vmem:[#allocation7 + $0x20] sm:$0xff]  ;;  %v269_v31 = vld [vmem:[#allocation8 + $0x308] sm:$0xff] }
  0x2a   :  { %156 = vmatpush.msra.mxu0 %v142_v11  ;;  %473 = vmatpush.msra.mxu3 %v292_v16  ;;  %v270_v32 = vld [vmem:[#allocation8 + $0x310] sm:$0xff]  ;;  %v260_v33 = vld [vmem:[#allocation8 + $0x2c0] sm:$0xff]  ;;  %v135_v34 = vld [vmem:[#allocation7 + $0x18] sm:$0xff] }
  0x2b   :  { %981 = vmatmul.msk.f32.vlgmr.msrb.gmra.mxu1 %vm309_vm0, %v1277_v7  ;;  %v261_v35 = vld [vmem:[#allocation8 + $0x2c8] sm:$0xff]  ;;  %v262_v36 = vld [vmem:[#allocation8 + $0x2d0] sm:$0xff]  ;;  %v252_v37 = vld [vmem:[#allocation8 + $0x280] sm:$0xff] }
  0x2c   :  { %157 = vmatpush.msra.mxu0 %v141_v15  ;;  %982 = vmatmul.msk.f32.vlgmr.msrb.gmra.mxu2 %vm309_vm0, %v1277_v7  ;;  %v134_v38 = vld [vmem:[#allocation7 + $0x10] sm:$0xff]  ;;  %v253_v39 = vld [vmem:[#allocation8 + $0x288] sm:$0xff]  ;;  %v244_v41 = vld [vmem:[#allocation8 + $0x240] sm:$0xff] }
  0x2d   :  { %493 = vmatpush.msrb.mxu1 %v293_v19  ;;  %513 = vmatpush.msrb.mxu2 %v294_v20  ;;  %v254_v40 = vld [vmem:[#allocation8 + $0x290] sm:$0xff]  ;;  %v133_v42 = vld [vmem:[#allocation7 + $0x8] sm:$0xff]  ;;  %v236_v45 = vld [vmem:[#allocation8 + $0x200] sm:$0xff] }
  0x2e   :  { %158 = vmatpush.msra.mxu0 %v140_v17  ;;  %474 = vmatpush.msra.mxu3 %v284_v21  ;;  %v245_v43 = vld [vmem:[#allocation8 + $0x248] sm:$0xff]  ;;  %v246_v44 = vld [vmem:[#allocation8 + $0x250] sm:$0xff]  ;;  %v132_v46 = vld [vmem:[#allocation7] sm:$0xff] }
  0x2f   :  { %494 = vmatpush.msrb.mxu1 %v285_v23  ;;  %514 = vmatpush.msrb.mxu2 %v286_v24  ;;  %v237_v47 = vld [vmem:[#allocation8 + $0x208] sm:$0xff]  ;;  %v131_v48 = vld [vmem:[#allocation2] sm:$0xff]  ;;  %v295_v50 = vld [vmem:[#allocation8 + $0x3d8] sm:$0xff] }
  0x30   :  { %159 = vmatpush.msra.mxu0 %v139_v18  ;;  %475 = vmatpush.msra.mxu3 %v276_v25  ;;  %v238_v49 = vld [vmem:[#allocation8 + $0x210] sm:$0xff]  ;;  %v228_v51 = vld [vmem:[#allocation8 + $0x1c0] sm:$0xff]  ;;  %v229_v52 = vld [vmem:[#allocation8 + $0x1c8] sm:$0xff] }
  0x31   :  { %495 = vmatpush.msrb.mxu1 %v277_v27  ;;  %515 = vmatpush.msrb.mxu2 %v278_v28  ;;  %v230_v53 = vld [vmem:[#allocation8 + $0x1d0] sm:$0xff]  ;;  %v287_v54 = vld [vmem:[#allocation8 + $0x398] sm:$0xff]  ;;  %v220_v55 = vld [vmem:[#allocation8 + $0x180] sm:$0xff] }
  0x32   :  { %160 = vmatpush.msra.mxu0 %v138_v22  ;;  %476 = vmatpush.msra.mxu3 %v268_v29  ;;  %v221_v56 = vld [vmem:[#allocation8 + $0x188] sm:$0xff]  ;;  %v222_v57 = vld [vmem:[#allocation8 + $0x190] sm:$0xff]  ;;  %v279_v58 = vld [vmem:[#allocation8 + $0x358] sm:$0xff] }
  0x33   :  { %496 = vmatpush.msrb.mxu1 %v269_v31  ;;  %516 = vmatpush.msrb.mxu2 %v270_v32  ;;  %v212_v59 = vld [vmem:[#allocation8 + $0x140] sm:$0xff]  ;;  %v213_v60 = vld [vmem:[#allocation8 + $0x148] sm:$0xff]  ;;  %v214_v61 = vld [vmem:[#allocation8 + $0x150] sm:$0xff] }
  0x34   :  { %161 = vmatpush.msra.mxu0 %v137_v26  ;;  %477 = vmatpush.msra.mxu3 %v260_v33  ;;  %v271_v62 = vld [vmem:[#allocation8 + $0x318] sm:$0xff]  ;;  %v204_v63 = vld [vmem:[#allocation8 + $0x100] sm:$0xff]  ;;  %v205_v0 = vld [vmem:[#allocation8 + $0x108] sm:$0xff] }
  0x35   :  { %497 = vmatpush.msrb.mxu1 %v261_v35  ;;  %517 = vmatpush.msrb.mxu2 %v262_v36  ;;  %v206_v1 = vld [vmem:[#allocation8 + $0x110] sm:$0xff]  ;;  %v263_v2 = vld [vmem:[#allocation8 + $0x2d8] sm:$0xff]  ;;  %v196_v3 = vld [vmem:[#allocation8 + $0xc0] sm:$0xff] }
  0x36   :  { %162 = vmatpush.msra.mxu0 %v136_v30  ;;  %478 = vmatpush.msra.mxu3 %v252_v37  ;;  %v197_v4 = vld [vmem:[#allocation8 + $0xc8] sm:$0xff]  ;;  %v198_v5 = vld [vmem:[#allocation8 + $0xd0] sm:$0xff]  ;;  %v255_v6 = vld [vmem:[#allocation8 + $0x298] sm:$0xff] }
  0x37   :  { %498 = vmatpush.msrb.mxu1 %v253_v39  ;;  %518 = vmatpush.msrb.mxu2 %v254_v40  ;;  %v188_v8 = vld [vmem:[#allocation8 + $0x80] sm:$0xff]  ;;  %v189_v9 = vld [vmem:[#allocation8 + $0x88] sm:$0xff]  ;;  %v190_v10 = vld [vmem:[#allocation8 + $0x90] sm:$0xff] }
  0x38   :  { %163 = vmatpush.msra.mxu0 %v135_v34  ;;  %479 = vmatpush.msra.mxu3 %v244_v41  ;;  %v247_v11 = vld [vmem:[#allocation8 + $0x258] sm:$0xff]  ;;  %v180_v12 = vld [vmem:[#allocation8 + $0x40] sm:$0xff]  ;;  %v181_v13 = vld [vmem:[#allocation8 + $0x48] sm:$0xff] }
  0x39   :  { %499 = vmatpush.msrb.mxu1 %v245_v43  ;;  %519 = vmatpush.msrb.mxu2 %v246_v44  ;;  %v182_v14 = vld [vmem:[#allocation8 + $0x50] sm:$0xff]  ;;  %v239_v15 = vld [vmem:[#allocation8 + $0x218] sm:$0xff]  ;;  %v172_v16 = vld [vmem:[#allocation8] sm:$0xff] }
  0x3a   :  { %164 = vmatpush.msra.mxu0 %v134_v38  ;;  %480 = vmatpush.msra.mxu3 %v236_v45  ;;  %v173_v17 = vld [vmem:[#allocation8 + $0x8] sm:$0xff]  ;;  %v174_v18 = vld [vmem:[#allocation8 + $0x10] sm:$0xff]  ;;  %v231_v19 = vld [vmem:[#allocation8 + $0x1d8] sm:$0xff] }
  0x3b   :  { %500 = vmatpush.msrb.mxu1 %v237_v47  ;;  %520 = vmatpush.msrb.mxu2 %v238_v49  ;;  %v223_v20 = vld [vmem:[#allocation8 + $0x198] sm:$0xff]  ;;  %v296_v21 = vld [vmem:[#allocation8 + $0x3e0] sm:$0xff]  ;;  %v297_v22 = vld [vmem:[#allocation8 + $0x3e8] sm:$0xff] }
  0x3c   :  { %165 = vmatpush.msra.mxu0 %v133_v42  ;;  %481 = vmatpush.msra.mxu3 %v228_v51  ;;  %v298_v23 = vld [vmem:[#allocation8 + $0x3f0] sm:$0xff]  ;;  %v215_v24 = vld [vmem:[#allocation8 + $0x158] sm:$0xff]  ;;  %v288_v25 = vld [vmem:[#allocation8 + $0x3a0] sm:$0xff] }
  0x3d   :  { %501 = vmatpush.msrb.mxu1 %v229_v52  ;;  %521 = vmatpush.msrb.mxu2 %v230_v53  ;;  %v289_v26 = vld [vmem:[#allocation8 + $0x3a8] sm:$0xff]  ;;  %v290_v27 = vld [vmem:[#allocation8 + $0x3b0] sm:$0xff]  ;;  %v207_v28 = vld [vmem:[#allocation8 + $0x118] sm:$0xff] }
  0x3e   :  { %166 = vmatpush.msra.mxu0 %v132_v46  ;;  %482 = vmatpush.msra.mxu3 %v220_v55  ;;  %v280_v29 = vld [vmem:[#allocation8 + $0x360] sm:$0xff]  ;;  %v281_v30 = vld [vmem:[#allocation8 + $0x368] sm:$0xff]  ;;  %v282_v31 = vld [vmem:[#allocation8 + $0x370] sm:$0xff] }
  0x3f   :  { %167 = vmatmul.f32.vlgmr.msra.gmra.mxu0 %v131_v48  ;;  %502 = vmatpush.msrb.mxu1 %v221_v56  ;;  %v199_v32 = vld [vmem:[#allocation8 + $0xd8] sm:$0xff]  ;;  %v272_v33 = vld [vmem:[#allocation8 + $0x320] sm:$0xff]  ;;  %v274_v34 = vld [vmem:[#allocation8 + $0x330] sm:$0xff] }
  0x40   :  { %533 = vmatpush.msrb.mxu0 %v295_v50  ;;  %522 = vmatpush.msrb.mxu2 %v222_v57  ;;  %v191_v35 = vld [vmem:[#allocation8 + $0x98] sm:$0xff]  ;;  %v264_v36 = vld [vmem:[#allocation8 + $0x2e0] sm:$0xff]  ;;  %v265_v37 = vld [vmem:[#allocation8 + $0x2e8] sm:$0xff] }
  0x41   :  { %483 = vmatpush.msra.mxu3 %v212_v59  ;;  %503 = vmatpush.msrb.mxu1 %v213_v60  ;;  %v266_v38 = vld [vmem:[#allocation8 + $0x2f0] sm:$0xff]  ;;  %v183_v39 = vld [vmem:[#allocation8 + $0x58] sm:$0xff]  ;;  %v256_v40 = vld [vmem:[#allocation8 + $0x2a0] sm:$0xff] }
  0x42   :  { %534 = vmatpush.msrb.mxu0 %v287_v54  ;;  %523 = vmatpush.msrb.mxu2 %v214_v61  ;;  %v257_v41 = vld [vmem:[#allocation8 + $0x2a8] sm:$0xff]  ;;  %v258_v42 = vld [vmem:[#allocation8 + $0x2b0] sm:$0xff]  ;;  %v175_v43 = vld [vmem:[#allocation8 + $0x18] sm:$0xff] }
  0x43   :  { %484 = vmatpush.msra.mxu3 %v204_v63  ;;  %504 = vmatpush.msrb.mxu1 %v205_v0  ;;  %v248_v44 = vld [vmem:[#allocation8 + $0x260] sm:$0xff]  ;;  %v299_v45 = vld [vmem:[#allocation8 + $0x3f8] sm:$0xff]  ;;  %v249_v46 = vld [vmem:[#allocation8 + $0x268] sm:$0xff] }
  0x44   :  { %535 = vmatpush.msrb.mxu0 %v279_v58  ;;  %524 = vmatpush.msrb.mxu2 %v206_v1  ;;  %v250_v47 = vld [vmem:[#allocation8 + $0x270] sm:$0xff]  ;;  %v291_v48 = vld [vmem:[#allocation8 + $0x3b8] sm:$0xff]  ;;  %v240_v54 = vld [vmem:[#allocation8 + $0x220] sm:$0xff] }
  0x45   :  { %485 = vmatpush.msra.mxu3 %v196_v3  ;;  %505 = vmatpush.msrb.mxu1 %v197_v4  ;;  %v283_v49 = vld [vmem:[#allocation8 + $0x378] sm:$0xff]  ;;  %v241_v55 = vld [vmem:[#allocation8 + $0x228] sm:$0xff]  ;;  %v242_v56 = vld [vmem:[#allocation8 + $0x230] sm:$0xff] }
  0x46   :  { %536 = vmatpush.msrb.mxu0 %v271_v62  ;;  %525 = vmatpush.msrb.mxu2 %v198_v5  ;;  %v275_v50 = vld [vmem:[#allocation8 + $0x338] sm:$0xff]  ;;  %v232_v58 = vld [vmem:[#allocation8 + $0x1e0] sm:$0xff]  ;;  %v233_v59 = vld [vmem:[#allocation8 + $0x1e8] sm:$0xff] }
  0x47   :  { %486 = vmatpush.msra.mxu3 %v188_v8  ;;  %506 = vmatpush.msrb.mxu1 %v189_v9  ;;  %v267_v51 = vld [vmem:[#allocation8 + $0x2f8] sm:$0xff]  ;;  %v234_v60 = vld [vmem:[#allocation8 + $0x1f0] sm:$0xff]  ;;  %v224_v62 = vld [vmem:[#allocation8 + $0x1a0] sm:$0xff] }
  0x48   :  { %537 = vmatpush.msrb.mxu0 %v263_v2  ;;  %526 = vmatpush.msrb.mxu2 %v190_v10  ;;  %v259_v52 = vld [vmem:[#allocation8 + $0x2b8] sm:$0xff]  ;;  %v225_v63 = vld [vmem:[#allocation8 + $0x1a8] sm:$0xff]  ;;  %v226_v0 = vld [vmem:[#allocation8 + $0x1b0] sm:$0xff] }
  0x49   :  { %487 = vmatpush.msra.mxu3 %v180_v12  ;;  %507 = vmatpush.msrb.mxu1 %v181_v13  ;;  %v251_v53 = vld [vmem:[#allocation8 + $0x278] sm:$0xff]  ;;  %v216_v2 = vld [vmem:[#allocation8 + $0x160] sm:$0xff]  ;;  %v217_v3 = vld [vmem:[#allocation8 + $0x168] sm:$0xff] }
  0x4a   :  { %538 = vmatpush.msrb.mxu0 %v255_v6  ;;  %527 = vmatpush.msrb.mxu2 %v182_v14  ;;  %v243_v57 = vld [vmem:[#allocation8 + $0x238] sm:$0xff]  ;;  %v218_v4 = vld [vmem:[#allocation8 + $0x170] sm:$0xff]  ;;  %v208_v6 = vld [vmem:[#allocation8 + $0x120] sm:$0xff] }
  0x4b   :  { %488 = vmatpush.msra.mxu3 %v172_v16  ;;  %508 = vmatpush.msrb.mxu1 %v173_v17  ;;  %v235_v61 = vld [vmem:[#allocation8 + $0x1f8] sm:$0xff]  ;;  %v209_v8 = vld [vmem:[#allocation8 + $0x128] sm:$0xff]  ;;  %v210_v9 = vld [vmem:[#allocation8 + $0x130] sm:$0xff] }
  0x4c   :  { %539 = vmatpush.msrb.mxu0 %v247_v11  ;;  %528 = vmatpush.msrb.mxu2 %v174_v18  ;;  %v227_v1 = vld [vmem:[#allocation8 + $0x1b8] sm:$0xff]  ;;  %v200_v11 = vld [vmem:[#allocation8 + $0xe0] sm:$0xff]  ;;  %v201_v12 = vld [vmem:[#allocation8 + $0xe8] sm:$0xff] }
  0x4d   :  { %983 = vmatmul.msk.f32.vlgmr.msrb.gmra.mxu3 %vm309_vm0, %v1277_v7  ;;  %984 = vmatmul.msk.f32.vlgmr.msra.gmra.mxu1 %vm309_vm0, %v1277_v7  ;;  %v219_v5 = vld [vmem:[#allocation8 + $0x178] sm:$0xff]  ;;  %v202_v13 = vld [vmem:[#allocation8 + $0xf0] sm:$0xff]  ;;  %v193_v16 = vld [vmem:[#allocation8 + $0xa8] sm:$0xff] }
  0x4e   :  { %540 = vmatpush.msrb.mxu0 %v239_v15  ;;  %985 = vmatmul.msk.f32.vlgmr.msra.gmra.mxu2 %vm309_vm0, %v1277_v7  ;;  %v273_v7 = vld [vmem:[#allocation8 + $0x328] sm:$0xff]  ;;  %v211_v10 = vld [vmem:[#allocation8 + $0x138] sm:$0xff]  ;;  %v192_v15 = vld [vmem:[#allocation8 + $0xa0] sm:$0xff] }
  0x4f   :  { %553 = vmatpush.msrb.mxu3 %v296_v21  ;;  %573 = vmatpush.msra.mxu1 %v297_v22  ;;  %v203_v14 = vld [vmem:[#allocation8 + $0xf8] sm:$0xff]  ;;  %v194_v17 = vld [vmem:[#allocation8 + $0xb0] sm:$0xff] }
  0x50   :  { %541 = vmatpush.msrb.mxu0 %v231_v19  ;;  %593 = vmatpush.msra.mxu2 %v298_v23  ;;  %v195_v18 = vld [vmem:[#allocation8 + $0xb8] sm:$0xff]  ;;  %v184_v19 = vld [vmem:[#allocation8 + $0x60] sm:$0xff]  ;;  %v186_v21 = vld [vmem:[#allocation8 + $0x70] sm:$0xff] }
  0x51   :  { %554 = vmatpush.msrb.mxu3 %v288_v25  ;;  %574 = vmatpush.msra.mxu1 %v289_v26  ;;  %v187_v22 = vld [vmem:[#allocation8 + $0x78] sm:$0xff]  ;;  %v176_v23 = vld [vmem:[#allocation8 + $0x20] sm:$0xff]  ;;  %v178_v25 = vld [vmem:[#allocation8 + $0x30] sm:$0xff] }
  0x52   :  { %542 = vmatpush.msrb.mxu0 %v223_v20  ;;  %594 = vmatpush.msra.mxu2 %v290_v27  ;;  %v185_v20 = vld [vmem:[#allocation8 + $0x68] sm:$0xff]  ;;  %v179_v26 = vld [vmem:[#allocation8 + $0x38] sm:$0xff]  ;;  %v998_v27 = vld [vmem:[#allocation13] ss:$0 sm:$0xff] }
  0x53   :  { %555 = vmatpush.msrb.mxu3 %v280_v29  ;;  %575 = vmatpush.msra.mxu1 %v281_v30 }
  0x54   :  { %543 = vmatpush.msrb.mxu0 %v215_v24  ;;  %595 = vmatpush.msra.mxu2 %v282_v31  ;;  %v177_v24 = vld [vmem:[#allocation8 + $0x28] sm:$0xff]  ;;  %v697_v31 = vld [vmem:[#allocation11 + $0xf8] sm:$0xff] }
  0x55   :  { %556 = vmatpush.msrb.mxu3 %v272_v33  ;;  %576 = vmatpush.msra.mxu1 %v273_v7  ;;  %v681_v33 = vld [vmem:[#allocation11 + $0x78] sm:$0xff] }
  0x56   :  { %544 = vmatpush.msrb.mxu0 %v207_v28  ;;  %596 = vmatpush.msra.mxu2 %v274_v34  ;;  %v713_v7 = vld [vmem:[#allocation11 + $0x178] sm:$0xff]  ;;  %v696_v34 = vld [vmem:[#allocation11 + $0xf0] sm:$0xff] }
  0x57   :  { %557 = vmatpush.msrb.mxu3 %v264_v36  ;;  %577 = vmatpush.msra.mxu1 %v265_v37  ;;  %v680_v36 = vld [vmem:[#allocation11 + $0x70] sm:$0xff] }
  0x58   :  { %545 = vmatpush.msrb.mxu0 %v199_v32  ;;  %597 = vmatpush.msra.mxu2 %v266_v38  ;;  %v729_v32 = vld [vmem:[#allocation11 + $0x1f8] sm:$0xff]  ;;  %v712_v37 = vld [vmem:[#allocation11 + $0x170] sm:$0xff]  ;;  %v695_v38 = vld [vmem:[#allocation11 + $0xe8] sm:$0xff] }
  0x59   :  { %558 = vmatpush.msrb.mxu3 %v256_v40  ;;  %578 = vmatpush.msra.mxu1 %v257_v41  ;;  %v679_v40 = vld [vmem:[#allocation11 + $0x68] sm:$0xff] }
  0x5a   :  { %546 = vmatpush.msrb.mxu0 %v191_v35  ;;  %598 = vmatpush.msra.mxu2 %v258_v42  ;;  %v728_v35 = vld [vmem:[#allocation11 + $0x1f0] sm:$0xff]  ;;  %v711_v41 = vld [vmem:[#allocation11 + $0x168] sm:$0xff]  ;;  %v694_v42 = vld [vmem:[#allocation11 + $0xe0] sm:$0xff] }
  0x5b   :  { %559 = vmatpush.msrb.mxu3 %v248_v44  ;;  %579 = vmatpush.msra.mxu1 %v249_v46  ;;  %v678_v44 = vld [vmem:[#allocation11 + $0x60] sm:$0xff]  ;;  %v693_v46 = vld [vmem:[#allocation11 + $0xd8] sm:$0xff] }
  0x5c   :  { %547 = vmatpush.msrb.mxu0 %v183_v39  ;;  %599 = vmatpush.msra.mxu2 %v250_v47  ;;  %v727_v39 = vld [vmem:[#allocation11 + $0x1e8] sm:$0xff]  ;;  %v725_v47 = vld [vmem:[#allocation11 + $0x1d8] sm:$0xff] }
  0x5d   :  { %560 = vmatpush.msrb.mxu3 %v240_v54  ;;  %580 = vmatpush.msra.mxu1 %v241_v55  ;;  %v691_v54 = vld [vmem:[#allocation11 + $0xc8] sm:$0xff] }
  0x5e   :  { %548 = vmatpush.msrb.mxu0 %v175_v43  ;;  %600 = vmatpush.msra.mxu2 %v242_v56  ;;  %v726_v43 = vld [vmem:[#allocation11 + $0x1e0] sm:$0xff]  ;;  %v723_v55 = vld [vmem:[#allocation11 + $0x1c8] sm:$0xff] }
  0x5f   :  { %561 = vmatpush.msrb.mxu3 %v232_v58  ;;  %581 = vmatpush.msra.mxu1 %v233_v59  ;;  %v675_v56 = vld [vmem:[#allocation11 + $0x48] sm:$0xff]  ;;  %v690_v58 = vld [vmem:[#allocation11 + $0xc0] sm:$0xff] }
  0x60   :  { %613 = vmatpush.msra.mxu0 %v299_v45  ;;  %601 = vmatpush.msra.mxu2 %v234_v60  ;;  %v710_v45 = vld [vmem:[#allocation11 + $0x160] sm:$0xff] }
  0x61   :  { %562 = vmatpush.msrb.mxu3 %v224_v62  ;;  %582 = vmatpush.msra.mxu1 %v225_v63  ;;  %v722_v59 = vld [vmem:[#allocation11 + $0x1c0] sm:$0xff]  ;;  %v689_v62 = vld [vmem:[#allocation11 + $0xb8] sm:$0xff] }
  0x62   :  { %614 = vmatpush.msra.mxu0 %v291_v48  ;;  %602 = vmatpush.msra.mxu2 %v226_v0  ;;  %v677_v48 = vld [vmem:[#allocation11 + $0x58] sm:$0xff]  ;;  %v674_v60 = vld [vmem:[#allocation11 + $0x40] sm:$0xff] }
  0x63   :  { %563 = vmatpush.msrb.mxu3 %v216_v2  ;;  %583 = vmatpush.msra.mxu1 %v217_v3  ;;  %v721_v63 = vld [vmem:[#allocation11 + $0x1b8] sm:$0xff]  ;;  %v688_v2 = vld [vmem:[#allocation11 + $0xb0] sm:$0xff] }
  0x64   :  { %615 = vmatpush.msra.mxu0 %v283_v49  ;;  %603 = vmatpush.msra.mxu2 %v218_v4  ;;  %v709_v49 = vld [vmem:[#allocation11 + $0x158] sm:$0xff]  ;;  %v720_v3 = vld [vmem:[#allocation11 + $0x1b0] sm:$0xff] }
  0x65   :  { %564 = vmatpush.msrb.mxu3 %v208_v6  ;;  %584 = vmatpush.msra.mxu1 %v209_v8  ;;  %v673_v0 = vld [vmem:[#allocation11 + $0x38] sm:$0xff]  ;;  %v672_v4 = vld [vmem:[#allocation11 + $0x30] sm:$0xff]  ;;  %v687_v6 = vld [vmem:[#allocation11 + $0xa8] sm:$0xff] }
  0x66   :  { %616 = vmatpush.msra.mxu0 %v275_v50  ;;  %604 = vmatpush.msra.mxu2 %v210_v9  ;;  %v692_v50 = vld [vmem:[#allocation11 + $0xd0] sm:$0xff]  ;;  %v719_v8 = vld [vmem:[#allocation11 + $0x1a8] sm:$0xff] }
  0x67   :  { %565 = vmatpush.msrb.mxu3 %v200_v11  ;;  %585 = vmatpush.msra.mxu1 %v201_v12  ;;  %v671_v9 = vld [vmem:[#allocation11 + $0x28] sm:$0xff]  ;;  %v686_v11 = vld [vmem:[#allocation11 + $0xa0] sm:$0xff] }
  0x68   :  { %617 = vmatpush.msra.mxu0 %v267_v51  ;;  %605 = vmatpush.msra.mxu2 %v202_v13  ;;  %v724_v51 = vld [vmem:[#allocation11 + $0x1d0] sm:$0xff]  ;;  %v718_v12 = vld [vmem:[#allocation11 + $0x1a0] sm:$0xff] }
  0x69   :  { %566 = vmatpush.msrb.mxu3 %v192_v15  ;;  %586 = vmatpush.msra.mxu1 %v193_v16  ;;  %v670_v13 = vld [vmem:[#allocation11 + $0x20] sm:$0xff]  ;;  %v685_v15 = vld [vmem:[#allocation11 + $0x98] sm:$0xff] }
  0x6a   :  { %618 = vmatpush.msra.mxu0 %v259_v52  ;;  %606 = vmatpush.msra.mxu2 %v194_v17  ;;  %v676_v52 = vld [vmem:[#allocation11 + $0x50] sm:$0xff]  ;;  %v717_v16 = vld [vmem:[#allocation11 + $0x198] sm:$0xff] }
  0x6b   :  { %567 = vmatpush.msrb.mxu3 %v184_v19  ;;  %587 = vmatpush.msra.mxu1 %v185_v20  ;;  %v669_v17 = vld [vmem:[#allocation11 + $0x18] sm:$0xff]  ;;  %v684_v19 = vld [vmem:[#allocation11 + $0x90] sm:$0xff] }
  0x6c   :  { %619 = vmatpush.msra.mxu0 %v251_v53  ;;  %607 = vmatpush.msra.mxu2 %v186_v21  ;;  %v708_v53 = vld [vmem:[#allocation11 + $0x150] sm:$0xff] }
  0x6d   :  { %568 = vmatpush.msrb.mxu3 %v176_v23  ;;  %588 = vmatpush.msra.mxu1 %v177_v24  ;;  %v716_v20 = vld [vmem:[#allocation11 + $0x190] sm:$0xff]  ;;  %v683_v23 = vld [vmem:[#allocation11 + $0x88] sm:$0xff] }
  0x6e   :  { %620 = vmatpush.msra.mxu0 %v243_v57  ;;  %608 = vmatpush.msra.mxu2 %v178_v25  ;;  %v707_v57 = vld [vmem:[#allocation11 + $0x148] sm:$0xff]  ;;  %v668_v21 = vld [vmem:[#allocation11 + $0x10] sm:$0xff] }
  0x6f   :  { %v715_v24 = vld [vmem:[#allocation11 + $0x188] sm:$0xff] }
  0x70   :  { %621 = vmatpush.msra.mxu0 %v235_v61  ;;  %v706_v61 = vld [vmem:[#allocation11 + $0x140] sm:$0xff]  ;;  %v667_v25 = vld [vmem:[#allocation11 + $0x8] sm:$0xff] }
  0x72   :  { %622 = vmatpush.msra.mxu0 %v227_v1  ;;  %v705_v1 = vld [vmem:[#allocation11 + $0x138] sm:$0xff] }
  0x74   :  { %623 = vmatpush.msra.mxu0 %v219_v5  ;;  %v704_v5 = vld [vmem:[#allocation11 + $0x130] sm:$0xff] }
  0x76   :  { %624 = vmatpush.msra.mxu0 %v211_v10  ;;  %v703_v10 = vld [vmem:[#allocation11 + $0x128] sm:$0xff] }
  0x78   :  { %625 = vmatpush.msra.mxu0 %v203_v14  ;;  %v702_v14 = vld [vmem:[#allocation11 + $0x120] sm:$0xff] }
  0x7a   :  { %626 = vmatpush.msra.mxu0 %v195_v18  ;;  %v701_v18 = vld [vmem:[#allocation11 + $0x118] sm:$0xff] }
  0x7c   :  { %627 = vmatpush.msra.mxu0 %v187_v22  ;;  %v700_v22 = vld [vmem:[#allocation11 + $0x110] sm:$0xff] }
  0x7e   :  { %628 = vmatpush.msra.mxu0 %v179_v26  ;;  %v699_v26 = vld [vmem:[#allocation11 + $0x108] sm:$0xff] }
  0xbc   :  { %v168_v28 = vpop.f32.mrf.mxu0 }
  0xbd   :  { %v169_v29 = vadd.f32 %v998_v27, %v168_v28  ;;  %v682_v27 = vld [vmem:[#allocation11 + $0x80] sm:$0xff] }
  0xbe   :  { %v714_v28 = vld [vmem:[#allocation11 + $0x180] sm:$0xff] }
  0xbf   :  { %1000 = vtanh.f32 %v169_v29  ;;  %v761_v29 = vld [vmem:[#allocation11 + $0x2f8] sm:$0xff] }
  0xc5   :  { %v1001_v30 = vpop.eup %1000 }
  0xc6   :  { %489 = vmatmul.f32.vlgmr.msra.gmra.mxu3 %v1001_v30  ;;  %509 = vmatmul.f32.vlgmr.msrb.gmra.mxu1 %v1001_v30 }
  0xc7   :  { %529 = vmatmul.f32.vlgmr.msrb.gmra.mxu2 %v1001_v30  ;;  %549 = vmatmul.f32.vlgmr.msrb.gmra.mxu0 %v1001_v30 }
  0xc8   :  { %817 = vmatpush.msrb.mxu1 %v697_v31  ;;  %857 = vmatpush.msrb.mxu0 %v729_v32  ;;  %v666_v31 = vld [vmem:[#allocation11] sm:$0xff] }
  0xc9   :  { %797 = vmatpush.msra.mxu3 %v681_v33  ;;  %837 = vmatpush.msrb.mxu2 %v713_v7  ;;  %v698_v32 = vld [vmem:[#allocation11 + $0x100] sm:$0xff]  ;;  %v760_v33 = vld [vmem:[#allocation11 + $0x2f0] sm:$0xff] }
  0xca   :  { %818 = vmatpush.msrb.mxu1 %v696_v34  ;;  %858 = vmatpush.msrb.mxu0 %v728_v35  ;;  %v792_v7 = vld [vmem:[#allocation11 + $0x3f0] sm:$0xff]  ;;  %v745_v34 = vld [vmem:[#allocation11 + $0x278] sm:$0xff] }
  0xcb   :  { %798 = vmatpush.msra.mxu3 %v680_v36  ;;  %838 = vmatpush.msrb.mxu2 %v712_v37  ;;  %v777_v35 = vld [vmem:[#allocation11 + $0x378] sm:$0xff]  ;;  %v759_v36 = vld [vmem:[#allocation11 + $0x2e8] sm:$0xff] }
  0xcc   :  { %819 = vmatpush.msrb.mxu1 %v695_v38  ;;  %859 = vmatpush.msrb.mxu0 %v727_v39  ;;  %v791_v37 = vld [vmem:[#allocation11 + $0x3e8] sm:$0xff]  ;;  %v744_v38 = vld [vmem:[#allocation11 + $0x270] sm:$0xff] }
  0xcd   :  { %799 = vmatpush.msra.mxu3 %v679_v40  ;;  %839 = vmatpush.msrb.mxu2 %v711_v41  ;;  %v776_v39 = vld [vmem:[#allocation11 + $0x370] sm:$0xff]  ;;  %v758_v40 = vld [vmem:[#allocation11 + $0x2e0] sm:$0xff] }
  0xce   :  { %569 = vmatmul.f32.vlgmr.msrb.gmra.mxu3 %v1001_v30  ;;  %589 = vmatmul.f32.vlgmr.msra.gmra.mxu1 %v1001_v30  ;;  %v790_v41 = vld [vmem:[#allocation11 + $0x3e0] sm:$0xff] }
  0xcf   :  { %609 = vmatmul.f32.vlgmr.msra.gmra.mxu2 %v1001_v30  ;;  %629 = vmatmul.f32.vlgmr.msra.gmra.mxu0 %v1001_v30  ;;  %v793_v30 = vld [vmem:[#allocation11 + $0x3f8] sm:$0xff] }
  0xd0   :  { %820 = vmatpush.msrb.mxu1 %v694_v42  ;;  %860 = vmatpush.msrb.mxu0 %v726_v43  ;;  %v743_v42 = vld [vmem:[#allocation11 + $0x268] sm:$0xff] }
  0xd1   :  { %800 = vmatpush.msra.mxu3 %v678_v44  ;;  %840 = vmatpush.msrb.mxu2 %v710_v45  ;;  %v775_v43 = vld [vmem:[#allocation11 + $0x368] sm:$0xff]  ;;  %v757_v44 = vld [vmem:[#allocation11 + $0x2d8] sm:$0xff] }
  0xd2   :  { %821 = vmatpush.msrb.mxu1 %v693_v46  ;;  %861 = vmatpush.msrb.mxu0 %v725_v47  ;;  %v789_v45 = vld [vmem:[#allocation11 + $0x3d8] sm:$0xff]  ;;  %v742_v46 = vld [vmem:[#allocation11 + $0x260] sm:$0xff] }
  0xd3   :  { %801 = vmatpush.msra.mxu3 %v677_v48  ;;  %841 = vmatpush.msrb.mxu2 %v709_v49  ;;  %v774_v47 = vld [vmem:[#allocation11 + $0x360] sm:$0xff]  ;;  %v756_v48 = vld [vmem:[#allocation11 + $0x2d0] sm:$0xff] }
  0xd4   :  { %822 = vmatpush.msrb.mxu1 %v692_v50  ;;  %862 = vmatpush.msrb.mxu0 %v724_v51  ;;  %v788_v49 = vld [vmem:[#allocation11 + $0x3d0] sm:$0xff]  ;;  %v741_v50 = vld [vmem:[#allocation11 + $0x258] sm:$0xff] }
  0xd5   :  { %802 = vmatpush.msra.mxu3 %v676_v52  ;;  %842 = vmatpush.msrb.mxu2 %v708_v53  ;;  %v773_v51 = vld [vmem:[#allocation11 + $0x358] sm:$0xff]  ;;  %v755_v52 = vld [vmem:[#allocation11 + $0x2c8] sm:$0xff] }
  0xd6   :  { %823 = vmatpush.msrb.mxu1 %v691_v54  ;;  %863 = vmatpush.msrb.mxu0 %v723_v55  ;;  %v787_v53 = vld [vmem:[#allocation11 + $0x3c8] sm:$0xff]  ;;  %v754_v54 = vld [vmem:[#allocation11 + $0x2c0] sm:$0xff] }
  0xd7   :  { %803 = vmatpush.msra.mxu3 %v675_v56  ;;  %843 = vmatpush.msrb.mxu2 %v707_v57  ;;  %v786_v55 = vld [vmem:[#allocation11 + $0x3c0] sm:$0xff]  ;;  %v740_v56 = vld [vmem:[#allocation11 + $0x250] sm:$0xff]  ;;  %v753_v57 = vld [vmem:[#allocation11 + $0x2b8] sm:$0xff] }
  0xd8   :  { %824 = vmatpush.msrb.mxu1 %v690_v58  ;;  %864 = vmatpush.msrb.mxu0 %v722_v59  ;;  %v772_v58 = vld [vmem:[#allocation11 + $0x350] sm:$0xff]  ;;  %v785_v59 = vld [vmem:[#allocation11 + $0x3b8] sm:$0xff] }
  0xd9   :  { %804 = vmatpush.msra.mxu3 %v674_v60  ;;  %844 = vmatpush.msrb.mxu2 %v706_v61  ;;  %v739_v60 = vld [vmem:[#allocation11 + $0x248] sm:$0xff]  ;;  %v752_v61 = vld [vmem:[#allocation11 + $0x2b0] sm:$0xff] }
  0xda   :  { %825 = vmatpush.msrb.mxu1 %v689_v62  ;;  %865 = vmatpush.msrb.mxu0 %v721_v63  ;;  %v771_v62 = vld [vmem:[#allocation11 + $0x348] sm:$0xff]  ;;  %v784_v63 = vld [vmem:[#allocation11 + $0x3b0] sm:$0xff] }
  0xdb   :  { %805 = vmatpush.msra.mxu3 %v673_v0  ;;  %845 = vmatpush.msrb.mxu2 %v705_v1  ;;  %v1295_v0 = vpop.f32.mrf.mxu1  ;;  %v738_v1 = vld [vmem:[#allocation11 + $0x240] sm:$0xff] }
  0xdc   :  { %826 = vmatpush.msrb.mxu1 %v688_v2  ;;  %866 = vmatpush.msrb.mxu0 %v720_v3  ;;  %v751_v2 = vld [vmem:[#allocation11 + $0x2a8] sm:$0xff]  ;;  %v770_v3 = vld [vmem:[#allocation11 + $0x340] sm:$0xff] }
  0xdd   :  { %806 = vmatpush.msra.mxu3 %v672_v4  ;;  %846 = vmatpush.msrb.mxu2 %v704_v5  ;;  %v783_v4 = vld [vmem:[#allocation11 + $0x3a8] sm:$0xff]  ;;  %v737_v5 = vld [vmem:[#allocation11 + $0x238] sm:$0xff] }
  0xde   :  { %827 = vmatpush.msrb.mxu1 %v687_v6  ;;  %867 = vmatpush.msrb.mxu0 %v719_v8  ;;  %v750_v6 = vld [vmem:[#allocation11 + $0x2a0] sm:$0xff]  ;;  %v769_v8 = vld [vmem:[#allocation11 + $0x338] sm:$0xff] }
  0xdf   :  { %807 = vmatpush.msra.mxu3 %v671_v9  ;;  %847 = vmatpush.msrb.mxu2 %v703_v10  ;;  %v782_v9 = vld [vmem:[#allocation11 + $0x3a0] sm:$0xff]  ;;  %v736_v10 = vld [vmem:[#allocation11 + $0x230] sm:$0xff] }
  0xe0   :  { %828 = vmatpush.msrb.mxu1 %v686_v11  ;;  %868 = vmatpush.msrb.mxu0 %v718_v12  ;;  %v749_v11 = vld [vmem:[#allocation11 + $0x298] sm:$0xff]  ;;  %v768_v12 = vld [vmem:[#allocation11 + $0x330] sm:$0xff] }
  0xe1   :  { %808 = vmatpush.msra.mxu3 %v670_v13  ;;  %848 = vmatpush.msrb.mxu2 %v702_v14  ;;  %v781_v13 = vld [vmem:[#allocation11 + $0x398] sm:$0xff]  ;;  %v735_v14 = vld [vmem:[#allocation11 + $0x228] sm:$0xff] }
  0xe2   :  { %829 = vmatpush.msrb.mxu1 %v685_v15  ;;  %869 = vmatpush.msrb.mxu0 %v717_v16  ;;  %v748_v15 = vld [vmem:[#allocation11 + $0x290] sm:$0xff]  ;;  %v767_v16 = vld [vmem:[#allocation11 + $0x328] sm:$0xff] }
  0xe3   :  { %809 = vmatpush.msra.mxu3 %v669_v17  ;;  %849 = vmatpush.msrb.mxu2 %v701_v18  ;;  %v780_v17 = vld [vmem:[#allocation11 + $0x390] sm:$0xff]  ;;  %v734_v18 = vld [vmem:[#allocation11 + $0x220] sm:$0xff] }
  0xe4   :  { %830 = vmatpush.msrb.mxu1 %v684_v19  ;;  %870 = vmatpush.msrb.mxu0 %v716_v20  ;;  %v747_v19 = vld [vmem:[#allocation11 + $0x288] sm:$0xff]  ;;  %v766_v20 = vld [vmem:[#allocation11 + $0x320] sm:$0xff] }
  0xe5   :  { %810 = vmatpush.msra.mxu3 %v668_v21  ;;  %850 = vmatpush.msrb.mxu2 %v700_v22  ;;  %v350_v21 = vpop.f32.mrf.mxu2  ;;  %v779_v22 = vld [vmem:[#allocation11 + $0x388] sm:$0xff] }
  0xe6   :  { %831 = vmatpush.msrb.mxu1 %v683_v23  ;;  %871 = vmatpush.msrb.mxu0 %v715_v24  ;;  %v390_v23 = vpop.f32.mrf.mxu1  ;;  %v733_v24 = vld [vmem:[#allocation11 + $0x218] sm:$0xff] }
  0xe7   :  { %811 = vmatpush.msra.mxu3 %v667_v25  ;;  %851 = vmatpush.msrb.mxu2 %v699_v26  ;;  %v746_v25 = vld [vmem:[#allocation11 + $0x280] sm:$0xff]  ;;  %v765_v26 = vld [vmem:[#allocation11 + $0x318] sm:$0xff] }
  0xe8   :  { %832 = vmatpush.msrb.mxu1 %v682_v27  ;;  %872 = vmatpush.msrb.mxu0 %v714_v28  ;;  %v778_v27 = vld [vmem:[#allocation11 + $0x380] sm:$0xff]  ;;  %v732_v28 = vld [vmem:[#allocation11 + $0x210] sm:$0xff] }
  0xe9   :  { %812 = vmatpush.msra.mxu3 %v666_v31  ;;  %852 = vmatpush.msrb.mxu2 %v698_v32  ;;  %v763_v31 = vld [vmem:[#allocation11 + $0x308] sm:$0xff]  ;;  %v730_v32 = vld [vmem:[#allocation11 + $0x200] sm:$0xff] }
  0xea   :  { %897 = vmatpush.msra.mxu1 %v761_v29  ;;  %937 = vmatpush.msra.mxu0 %v793_v30  ;;  %v764_v29 = vld [vmem:[#allocation11 + $0x310] sm:$0xff]  ;;  %v731_v30 = vld [vmem:[#allocation11 + $0x208] sm:$0xff] }
  0xeb   :  { %877 = vmatpush.msrb.mxu3 %v745_v34  ;;  %917 = vmatpush.msra.mxu2 %v777_v35 }
  0xec   :  { %898 = vmatpush.msra.mxu1 %v760_v33  ;;  %938 = vmatpush.msra.mxu0 %v792_v7  ;;  %v762_v33 = vld [vmem:[#allocation11 + $0x300] sm:$0xff]  ;;  %v370_v7 = vpop.f32.mrf.mxu3 }
  0xed   :  { %878 = vmatpush.msrb.mxu3 %v744_v38  ;;  %918 = vmatpush.msra.mxu2 %v776_v39  ;;  %v410_v35 = vpop.f32.mrf.mxu2 }
  0xee   :  { %899 = vmatpush.msra.mxu1 %v759_v36  ;;  %939 = vmatpush.msra.mxu0 %v791_v37  ;;  %v450_v34 = vpop.f32.mrf.mxu1  ;;  %v129_v36 = vld [vmem:[#allocation13 + $0x1] sm:$0xff] }
  0xef   :  { %879 = vmatpush.msrb.mxu3 %v743_v42  ;;  %919 = vmatpush.msra.mxu2 %v775_v43  ;;  %v635_v39 = vperm.slane %v129_v36, 1 }
  0xf0   :  { %900 = vmatpush.msra.mxu1 %v758_v40  ;;  %940 = vmatpush.msra.mxu0 %v790_v41  ;;  %v637_v41 = vperm.slane %v129_v36, 3 }
  0xf1   :  { %880 = vmatpush.msrb.mxu3 %v742_v46  ;;  %920 = vmatpush.msra.mxu2 %v774_v47 }
  0xf2   :  { %901 = vmatpush.msra.mxu1 %v757_v44  ;;  %941 = vmatpush.msra.mxu0 %v789_v45 }
  0xf3   :  { %881 = vmatpush.msrb.mxu3 %v741_v50  ;;  %921 = vmatpush.msra.mxu2 %v773_v51  ;;  %v636_v51 = vperm.slane %v129_v36, 2 }
  0xf4   :  { %902 = vmatpush.msra.mxu1 %v756_v48  ;;  %942 = vmatpush.msra.mxu0 %v788_v49  ;;  %v430_v37 = vpop.f32.mrf.mxu3  ;;  %v634_v48 = vperm.slane %v129_v36, 0 }
  0xf5   :  { %882 = vmatpush.msrb.mxu3 %v740_v56  ;;  %922 = vmatpush.msra.mxu2 %v772_v58  ;;  %v470_v38 = vpop.f32.mrf.mxu2 }
  0xf6   :  { %903 = vmatpush.msra.mxu1 %v755_v52  ;;  %943 = vmatpush.msra.mxu0 %v787_v53 }
  0xf7   :  { %883 = vmatpush.msrb.mxu3 %v739_v60  ;;  %923 = vmatpush.msra.mxu2 %v771_v62 }
  0xf8   :  { %904 = vmatpush.msra.mxu1 %v754_v54  ;;  %944 = vmatpush.msra.mxu0 %v786_v55  ;;  %v639_v54 = vperm.slane %v129_v36, 5 }
  0xf9   :  { %884 = vmatpush.msrb.mxu3 %v738_v1  ;;  %924 = vmatpush.msra.mxu2 %v770_v3 }
  0xfa   :  { %905 = vmatpush.msra.mxu1 %v753_v57  ;;  %945 = vmatpush.msra.mxu0 %v785_v59  ;;  %v641_v57 = vperm.slane %v129_v36, 7 }
  0xfb   :  { %885 = vmatpush.msrb.mxu3 %v737_v5  ;;  %925 = vmatpush.msra.mxu2 %v769_v8  ;;  %v638_v5 = vperm.slane %v129_v36, 4  ;;  %v640_v8 = vperm.slane %v129_v36, 6 }
  0xfc   :  { %906 = vmatpush.msra.mxu1 %v752_v61  ;;  %946 = vmatpush.msra.mxu0 %v784_v63 }
  0xfd   :  { %886 = vmatpush.msrb.mxu3 %v736_v10  ;;  %926 = vmatpush.msra.mxu2 %v768_v12 }
  0xfe   :  { %907 = vmatpush.msra.mxu1 %v751_v2  ;;  %947 = vmatpush.msra.mxu0 %v783_v4 }
  0xff   :  { %887 = vmatpush.msrb.mxu3 %v735_v14  ;;  %927 = vmatpush.msra.mxu2 %v767_v16  ;;  %v999_v16 = vld [vmem:[#allocation13 + $0x9] ss:$0 sm:$0xff] }
 0x100   :  { %908 = vmatpush.msra.mxu1 %v750_v6  ;;  %948 = vmatpush.msra.mxu0 %v782_v9 }
 0x101   :  { %888 = vmatpush.msrb.mxu3 %v734_v18  ;;  %928 = vmatpush.msra.mxu2 %v766_v20 }
 0x102   :  { %909 = vmatpush.msra.mxu1 %v749_v11  ;;  %949 = vmatpush.msra.mxu0 %v781_v13 }
 0x103   :  { %889 = vmatpush.msrb.mxu3 %v733_v24  ;;  %929 = vmatpush.msra.mxu2 %v765_v26 }
 0x104   :  { %910 = vmatpush.msra.mxu1 %v748_v15  ;;  %950 = vmatpush.msra.mxu0 %v780_v17 }
 0x105   :  { %890 = vmatpush.msrb.mxu3 %v732_v28  ;;  %930 = vmatpush.msra.mxu2 %v764_v29 }
 0x106   :  { %911 = vmatpush.msra.mxu1 %v747_v19  ;;  %951 = vmatpush.msra.mxu0 %v779_v22 }
 0x107   :  { %891 = vmatpush.msrb.mxu3 %v731_v30  ;;  %931 = vmatpush.msra.mxu2 %v763_v31 }
 0x108   :  { %912 = vmatpush.msra.mxu1 %v746_v25  ;;  %952 = vmatpush.msra.mxu0 %v778_v27 }
 0x109   :  { %892 = vmatpush.msrb.mxu3 %v730_v32  ;;  %932 = vmatpush.msra.mxu2 %v762_v33 }
 0x143   :  { %v510_v40 = vpop.f32.mrf.mxu1 }
 0x144   :  { %v511_v42 = vadd.f32 %v510_v40, %v350_v21  ;;  %v550_v43 = vpop.f32.mrf.mxu0 }
 0x145   :  { %v551_v44 = vadd.f32 %v550_v43, %v390_v23 }
 0x146   :  { %v651_v45 = vadd.f32 %v635_v39, %v511_v42 }
 0x147   :  { %v653_v46 = vadd.f32 %v637_v41, %v551_v44 }
 0x148   :  { %v659_v47 = vmax.f32 %v651_v45, 0.0 }
 0x149   :  { %v661_v49 = vmax.f32 %v653_v46, 0.0  ;;  %v490_v50 = vpop.f32.mrf.mxu3 }
 0x14a   :  { %v491_v52 = vadd.f32 %v490_v50, %v1295_v0  ;;  %v530_v53 = vpop.f32.mrf.mxu2  ;;  %833 = vmatmul.f32.vlgmr.msrb.gmra.mxu1 %v659_v47 }
 0x14b   :  { %v531_v55 = vadd.f32 %v530_v53, %v370_v7  ;;  %873 = vmatmul.f32.vlgmr.msrb.gmra.mxu0 %v661_v49  ;;  %v590_v56 = vpop.f32.mrf.mxu1 }
 0x14c   :  { %v650_v58 = vadd.f32 %v634_v48, %v491_v52  ;;  %v591_v59 = vadd.f32 %v590_v56, %v430_v37  ;;  %v630_v60 = vpop.f32.mrf.mxu0 }
 0x14d   :  { %v652_v61 = vadd.f32 %v636_v51, %v531_v55  ;;  %v631_v62 = vadd.f32 %v630_v60, %v470_v38 }
 0x14e   :  { %v658_v63 = vmax.f32 %v650_v58, 0.0  ;;  %v655_v1 = vadd.f32 %v639_v54, %v591_v59 }
 0x14f   :  { %v660_v2 = vmax.f32 %v652_v61, 0.0  ;;  %v657_v3 = vadd.f32 %v641_v57, %v631_v62 }
 0x150   :  { %v663_v4 = vmax.f32 %v655_v1, 0.0  ;;  %813 = vmatmul.f32.vlgmr.msra.gmra.mxu3 %v658_v63 }
 0x151   :  { %v665_v0 = vmax.f32 %v657_v3, 0.0  ;;  %853 = vmatmul.f32.vlgmr.msrb.gmra.mxu2 %v660_v2  ;;  %v570_v6 = vpop.f32.mrf.mxu3 }
 0x152   :  { %v571_v9 = vadd.f32 %v570_v6, %v410_v35  ;;  %v610_v10 = vpop.f32.mrf.mxu2  ;;  %913 = vmatmul.f32.vlgmr.msra.gmra.mxu1 %v663_v4 }
 0x153   :  { %v611_v11 = vadd.f32 %v610_v10, %v450_v34  ;;  %953 = vmatmul.f32.vlgmr.msra.gmra.mxu0 %v665_v0 }
 0x154   :  { %v654_v12 = vadd.f32 %v638_v5, %v571_v9 }
 0x155   :  { %v656_v13 = vadd.f32 %v640_v8, %v611_v11 }
 0x156   :  { %v662_v14 = vmax.f32 %v654_v12, 0.0 }
 0x157   :  { %v664_v15 = vmax.f32 %v656_v13, 0.0 }
 0x158   :  { %893 = vmatmul.f32.vlgmr.msrb.gmra.mxu3 %v662_v14 }
 0x159   :  { %933 = vmatmul.f32.vlgmr.msra.gmra.mxu2 %v664_v15 }
 0x1c7   :  { %v834_v17 = vpop.f32.mrf.mxu1 }
 0x1c8   :  { %v874_v22 = vpop.f32.mrf.mxu0 }
 0x1cf   :  { %v914_v27 = vpop.f32.mrf.mxu1 }
 0x1d0   :  { %v954_v31 = vpop.f32.mrf.mxu0 }
 0x1d3   :  { %v814_v18 = vpop.f32.mrf.mxu3 }
 0x1d4   :  { %v815_v19 = vadd.f32 %v999_v16, %v814_v18  ;;  %v854_v20 = vpop.f32.mrf.mxu2 }
 0x1d6   :  { %v835_v21 = vadd.f32 %v834_v17, %v815_v19 }
 0x1d8   :  { %v855_v23 = vadd.f32 %v854_v20, %v835_v21 }
 0x1da   :  { %v875_v24 = vadd.f32 %v874_v22, %v855_v23 }
 0x1db   :  { %v894_v25 = vpop.f32.mrf.mxu3 }
 0x1dc   :  { %v895_v26 = vadd.f32 %v894_v25, %v875_v24  ;;  %v934_v29 = vpop.f32.mrf.mxu2 }
 0x1de   :  { %v915_v28 = vadd.f32 %v914_v27, %v895_v26 }
 0x1e0   :  { %v935_v30 = vadd.f32 %v934_v29, %v915_v28 }
 0x1e2   :  { %v955_v32 = vadd.f32 %v954_v31, %v935_v30 }
 0x1e4   :  { %957 = vst [vmem:[#allocation14] sm:$0xff] %v955_v32 }
 0x1e5   :  { %968 = dma.vmem_to_hbm [thread:$0]  %s964_s6, 128, %s966_s14, [#allocation4]  }
 0x1e6   :  { %1202 = dma.done.wait [#allocation4], 128  }
 0x1e7   :  { %1203 = vsyncadd [#allocation4], 4294967168 }
 0x1e8   :  { %973 = vsyncpa [#allocation3], 1 }
 0x1e9   :  { %974 = vsyncpa [#allocation6], 1 }
 0x1ea   :  { %975 = vsyncpa [#allocation9], 1 }
 0x1eb   :  { %976 = vsyncpa [#allocation12], 1 }
 0x1ec   :  { %977 = vsyncpa [#allocation4], 1 }

</bundles_post_ra>
